<compile_context>
chip_gen: v5e
topology: v5e:2x2
jax: 0.10.0
libtpu: 0.0.40
codegen_flags: <defaults>
</compile_context>

<pallas_src>
import functools

import jax
import jax.numpy as jnp
from jax import lax
from jax.experimental import pallas as pl
from jax.experimental.pallas import tpu as pltpu


def _round_up(x, m):
    return ((x + m - 1) // m) * m


def _attention_kernel(enc_ref, dec_ref, out_ref, m_sc, l_sc, acc_sc,
                      *, s_enc_valid, tk, need_mask):
    kv = pl.program_id(2)

    @pl.when(kv == 0)
    def _():
        m_sc[...] = jnp.full_like(m_sc, -jnp.inf)
        l_sc[...] = jnp.zeros_like(l_sc)
        acc_sc[...] = jnp.zeros_like(acc_sc)

    enc = enc_ref[0]      # (tk, Hp) — keys / values
    dec = dec_ref[0]      # (tq, Hp) — queries

    # scores_T[q, k] = sum_h dec[q,h] * enc[k,h]; equals a_t[k, q] of the PyTorch
    # module, so softmax over the last (lane) axis reproduces softmax(dim=1).
    # dot_general folds the "transpose" into the MXU matmul — nothing materialized.
    s = lax.dot_general(dec, enc,
                        dimension_numbers=(((1,), (1,)), ((), ())),
                        preferred_element_type=jnp.float32)        # (tq, tk) f32

    if need_mask:
        # Mask padded key columns so they get zero softmax weight.
        key_idx = kv * tk + lax.broadcasted_iota(jnp.int32, s.shape, 1)
        s = jnp.where(key_idx < s_enc_valid, s, -jnp.inf)

    m_prev = m_sc[...]                                             # (tq, 1)
    m_new = jnp.maximum(m_prev, s.max(axis=-1, keepdims=True))     # (tq, 1)
    alpha = jnp.exp(m_prev - m_new)                                # (tq, 1) f32
    p = jnp.exp(s - m_new)                                         # (tq, tk) f32
    l_sc[...] = alpha * l_sc[...] + p.sum(axis=-1, keepdims=True)
    # Deferred normalization: accumulate unnormalized PV. Cast probs to the input
    # dtype so bf16 inputs stay on the MXU's native bf16 path; accumulate in f32.
    acc_sc[...] = alpha * acc_sc[...] + jnp.dot(
        p.astype(enc_ref.dtype), enc, preferred_element_type=jnp.float32)
    m_sc[...] = m_new

    @pl.when(kv == pl.num_programs(2) - 1)
    def _():
        out_ref[0] = (acc_sc[...] *
                      pl.reciprocal(l_sc[...], approx=True)).astype(out_ref.dtype)


def attention(enc_output, dec_output, *, tq=256, tk=512):
    """enc_output: (B, S_enc, H), dec_output: (B, S_dec, H) -> c_t: (B, S_dec, H)."""
    B, S_enc, H = enc_output.shape
    Bd, S_dec, Hd = dec_output.shape
    assert B == Bd and H == Hd

    # Lane-dense hidden dim; tile sizes clamped to the (padded) problem size.
    Hp = _round_up(H, 128)
    tq = min(tq, _round_up(S_dec, 8))      # query tile (sublane-aligned)
    tk = min(tk, _round_up(S_enc, 128))    # key tile (lane-aligned score dim)
    Sd = _round_up(S_dec, tq)
    Se = _round_up(S_enc, tk)

    enc_p = enc_output
    dec_p = dec_output
    if (Se, Hp) != (S_enc, H):
        enc_p = jnp.pad(enc_output, ((0, 0), (0, Se - S_enc), (0, Hp - H)))
    if (Sd, Hp) != (S_dec, H):
        dec_p = jnp.pad(dec_output, ((0, 0), (0, Sd - S_dec), (0, Hp - H)))

    grid = (B, Sd // tq, Se // tk)
    kernel = functools.partial(_attention_kernel,
                               s_enc_valid=S_enc, tk=tk,
                               need_mask=(Se != S_enc))

    out = pl.pallas_call(
        kernel,
        out_shape=jax.ShapeDtypeStruct((B, Sd, Hp), enc_output.dtype),
        grid_spec=pltpu.PrefetchScalarGridSpec(
            num_scalar_prefetch=0,
            grid=grid,
            in_specs=[
                pl.BlockSpec((1, tk, Hp), lambda b, qi, ki: (b, ki, 0)),   # enc (K/V)
                pl.BlockSpec((1, tq, Hp), lambda b, qi, ki: (b, qi, 0)),   # dec (Q)
            ],
            out_specs=pl.BlockSpec((1, tq, Hp), lambda b, qi, ki: (b, qi, 0)),
            scratch_shapes=[
                pltpu.VMEM((tq, 1), jnp.float32),    # running max
                pltpu.VMEM((tq, 1), jnp.float32),    # running denominator
                pltpu.VMEM((tq, Hp), jnp.float32),   # unnormalized PV accumulator
            ],
        ),
        compiler_params=pltpu.CompilerParams(
            dimension_semantics=("parallel", "parallel", "arbitrary")),
    )(enc_p, dec_p)

    if (Sd, Hp) != (S_dec, H):
        out = out[:, :S_dec, :H]
    return out


def _attention_ref(enc_output, dec_output):
    # Pure-JAX reference mirroring the PyTorch forward exactly.
    a_t = jnp.einsum("bse,bde->bsd", enc_output, dec_output)   # (B, S_enc, S_dec)
    a_t = jax.nn.softmax(a_t, axis=1)
    c_t = jnp.einsum("bsd,bse->bde", a_t, enc_output)          # (B, S_dec, H)
    return c_t


if __name__ == "__main__":
    key = jax.random.PRNGKey(0)
    k_enc, k_dec = jax.random.split(key)

    B, S_enc, S_dec, H = 2, 8, 8, 32
    enc = jax.random.normal(k_enc, (B, S_enc, H), dtype=jnp.float32)
    dec = jax.random.normal(k_dec, (B, S_dec, H), dtype=jnp.float32)

    out = attention(enc, dec)
    jax.block_until_ready(out)

    ref = _attention_ref(enc, dec)
    assert out.shape == (B, S_dec, H)
    # Final normalization uses the EUP approximate reciprocal (~1e-4 rel. error),
    # so compare at a slightly relaxed tolerance.
    assert jnp.allclose(out, ref, atol=5e-3, rtol=5e-3), "mismatch vs reference"

    print("KERNEL_OK")
</pallas_src>

<mosaic_0001>
module attributes {stable_mosaic.version = 11 : i64} {
  func.func @_attention_kernel(%arg0: i32, %arg1: i32, %arg2: i32, %arg3: memref<1x128x128xf32, #tpu.memory_space<vmem>>, %arg4: memref<1x8x128xf32, #tpu.memory_space<vmem>>, %arg5: memref<1x8x128xf32, #tpu.memory_space<vmem>>, %arg6: memref<8x1xf32, #tpu.memory_space<vmem>>, %arg7: memref<8x1xf32, #tpu.memory_space<vmem>>, %arg8: memref<8x128xf32, #tpu.memory_space<vmem>>) attributes {dimension_semantics = [#tpu.dimension_semantics<parallel>, #tpu.dimension_semantics<parallel>, #tpu.dimension_semantics<arbitrary>], iteration_bounds = array<i64: 2, 1, 1>, scalar_prefetch = 0 : i64, scratch_operands = 3 : i64, tpu.core_type = #tpu.core_type<tc>, window_params = [{transform_indices = @transform_0, window_bounds = array<i64: 1, 128, 128>}, {transform_indices = @transform_1, window_bounds = array<i64: 1, 8, 128>}, {transform_indices = @transform_2, window_bounds = array<i64: 1, 8, 128>}]} {
    %c0_i32 = arith.constant 0 : i32
    %0 = arith.cmpi eq, %arg2, %c0_i32 : i32
    %1 = arith.extui %0 : i1 to i32
    %c0_i32_0 = arith.constant 0 : i32
    %2 = arith.cmpi ne, %1, %c0_i32_0 : i32
    scf.if %2 {
      %cst_24 = arith.constant 0xFF800000 : f32
      %41 = vector.broadcast %cst_24 : f32 to vector<8x1xf32>
      %c0_25 = arith.constant 0 : index
      %c0_26 = arith.constant 0 : index
      %42 = vector.load %arg6[%c0_25, %c0_26] : memref<8x1xf32, #tpu.memory_space<vmem>>, vector<8x1xf32>
      tpu.vector_store %arg6[%c0_25, %c0_26], %41 {strides = array<i32>} : memref<8x1xf32, #tpu.memory_space<vmem>>, vector<8x1xf32>,
      %cst_27 = arith.constant 0.000000e+00 : f32
      %43 = vector.broadcast %cst_27 : f32 to vector<8x1xf32>
      %c0_28 = arith.constant 0 : index
      %c0_29 = arith.constant 0 : index
      %44 = vector.load %arg7[%c0_28, %c0_29] : memref<8x1xf32, #tpu.memory_space<vmem>>, vector<8x1xf32>
      tpu.vector_store %arg7[%c0_28, %c0_29], %43 {strides = array<i32>} : memref<8x1xf32, #tpu.memory_space<vmem>>, vector<8x1xf32>,
      %cst_30 = arith.constant 0.000000e+00 : f32
      %45 = vector.broadcast %cst_30 : f32 to vector<8x128xf32>
      %c0_31 = arith.constant 0 : index
      %c0_32 = arith.constant 0 : index
      %46 = vector.load %arg8[%c0_31, %c0_32] : memref<8x128xf32, #tpu.memory_space<vmem>>, vector<8x128xf32>
      tpu.vector_store %arg8[%c0_31, %c0_32], %45 {strides = array<i32>} : memref<8x128xf32, #tpu.memory_space<vmem>>, vector<8x128xf32>,
    } else {
    }
    %c0 = arith.constant 0 : index
    %c0_1 = arith.constant 0 : index
    %c0_2 = arith.constant 0 : index
    %3 = vector.load %arg3[%c0, %c0_1, %c0_2] : memref<1x128x128xf32, #tpu.memory_space<vmem>>, vector<1x128x128xf32>
    %4 = vector.shape_cast %3 : vector<1x128x128xf32> to vector<128x128xf32>
    %c0_3 = arith.constant 0 : index
    %c0_4 = arith.constant 0 : index
    %c0_5 = arith.constant 0 : index
    %5 = vector.load %arg4[%c0_3, %c0_4, %c0_5] : memref<1x8x128xf32, #tpu.memory_space<vmem>>, vector<1x8x128xf32>
    %6 = vector.shape_cast %5 : vector<1x8x128xf32> to vector<8x128xf32>
    %cst = arith.constant dense<0.000000e+00> : vector<8x128xf32>
    %7 = tpu.matmul %6, %4, %cst {dimension_numbers = #tpu.dot_dimension_numbers<[1], [1], [0], [0], [0, 0, 1, 0], [], []>} : vector<8x128xf32>, vector<128x128xf32>, vector<8x128xf32> -> vector<8x128xf32>
    %c128_i32 = arith.constant 128 : i32
    %8 = arith.muli %arg2, %c128_i32 : i32
    %9 = tpu.iota {dimensions = array<i32: 1>} : vector<8x128xi32>
    %10 = vector.broadcast %8 : i32 to vector<8x128xi32>
    %11 = arith.addi %10, %9 : vector<8x128xi32>
    %c8_i32 = arith.constant 8 : i32
    %12 = vector.broadcast %c8_i32 : i32 to vector<8x128xi32>
    %13 = arith.cmpi slt, %11, %12 : vector<8x128xi32>
    %cst_6 = arith.constant 0xFF800000 : f32
    %14 = vector.broadcast %cst_6 : f32 to vector<8x128xf32>
    %15 = arith.select %13, %7, %14 : vector<8x128xi1>, vector<8x128xf32>
    %c0_7 = arith.constant 0 : index
    %c0_8 = arith.constant 0 : index
    %16 = vector.load %arg6[%c0_7, %c0_8] : memref<8x1xf32, #tpu.memory_space<vmem>>, vector<8x1xf32>
    %cst_9 = arith.constant dense<0xFF800000> : vector<8xf32>
    %17 = vector.multi_reduction <maximumf>, %15, %cst_9 [1] : vector<8x128xf32> to vector<8xf32>
    %18 = vector.shape_cast %17 : vector<8xf32> to vector<8x1xf32>
    %19 = arith.maximumf %16, %18 : vector<8x1xf32>
    %20 = arith.subf %16, %19 : vector<8x1xf32>
    %21 = math.exp %20 : vector<8x1xf32>
    %22 = vector.broadcast %19 : vector<8x1xf32> to vector<8x128xf32>
    %23 = arith.subf %15, %22 : vector<8x128xf32>
    %24 = math.exp %23 : vector<8x128xf32>
    %c0_10 = arith.constant 0 : index
    %c0_11 = arith.constant 0 : index
    %25 = vector.load %arg7[%c0_10, %c0_11] : memref<8x1xf32, #tpu.memory_space<vmem>>, vector<8x1xf32>
    %26 = arith.mulf %21, %25 : vector<8x1xf32>
    %cst_12 = arith.constant dense<0.000000e+00> : vector<8xf32>
    %27 = vector.multi_reduction <add>, %24, %cst_12 [1] : vector<8x128xf32> to vector<8xf32>
    %28 = vector.shape_cast %27 : vector<8xf32> to vector<8x1xf32>
    %29 = arith.addf %26, %28 : vector<8x1xf32>
    %c0_13 = arith.constant 0 : index
    %c0_14 = arith.constant 0 : index
    %30 = vector.load %arg7[%c0_13, %c0_14] : memref<8x1xf32, #tpu.memory_space<vmem>>, vector<8x1xf32>
    tpu.vector_store %arg7[%c0_13, %c0_14], %29 {strides = array<i32>} : memref<8x1xf32, #tpu.memory_space<vmem>>, vector<8x1xf32>,
    %c0_15 = arith.constant 0 : index
    %c0_16 = arith.constant 0 : index
    %31 = vector.load %arg8[%c0_15, %c0_16] : memref<8x128xf32, #tpu.memory_space<vmem>>, vector<8x128xf32>
    %32 = vector.broadcast %21 : vector<8x1xf32> to vector<8x128xf32>
    %33 = arith.mulf %32, %31 : vector<8x128xf32>
    %cst_17 = arith.constant dense<0.000000e+00> : vector<8x128xf32>
    %34 = tpu.matmul %24, %4, %cst_17 {dimension_numbers = #tpu.dot_dimension_numbers<[1], [0], [0], [1], [0, 0, 1, 1], [], []>} : vector<8x128xf32>, vector<128x128xf32>, vector<8x128xf32> -> vector<8x128xf32>
    %35 = arith.addf %33, %34 : vector<8x128xf32>
    %c0_18 = arith.constant 0 : index
    %c0_19 = arith.constant 0 : index
    %36 = vector.load %arg8[%c0_18, %c0_19] : memref<8x128xf32, #tpu.memory_space<vmem>>, vector<8x128xf32>
    tpu.vector_store %arg8[%c0_18, %c0_19], %35 {strides = array<i32>} : memref<8x128xf32, #tpu.memory_space<vmem>>, vector<8x128xf32>,
    %c0_20 = arith.constant 0 : index
    %c0_21 = arith.constant 0 : index
    %37 = vector.load %arg6[%c0_20, %c0_21] : memref<8x1xf32, #tpu.memory_space<vmem>>, vector<8x1xf32>
    tpu.vector_store %arg6[%c0_20, %c0_21], %19 {strides = array<i32>} : memref<8x1xf32, #tpu.memory_space<vmem>>, vector<8x1xf32>,
    %c0_i32_22 = arith.constant 0 : i32
    %38 = arith.cmpi eq, %arg2, %c0_i32_22 : i32
    %39 = arith.extui %38 : i1 to i32
    %c0_i32_23 = arith.constant 0 : i32
    %40 = arith.cmpi ne, %39, %c0_i32_23 : i32
    scf.if %40 {
      %c0_24 = arith.constant 0 : index
      %c0_25 = arith.constant 0 : index
      %41 = vector.load %arg8[%c0_24, %c0_25] : memref<8x128xf32, #tpu.memory_space<vmem>>, vector<8x128xf32>
      %c0_26 = arith.constant 0 : index
      %c0_27 = arith.constant 0 : index
      %42 = vector.load %arg7[%c0_26, %c0_27] : memref<8x1xf32, #tpu.memory_space<vmem>>, vector<8x1xf32>
      %43 = tpu.reciprocal %42 {approx = true} : vector<8x1xf32> -> vector<8x1xf32>
      %44 = vector.broadcast %43 : vector<8x1xf32> to vector<8x128xf32>
      %45 = arith.mulf %41, %44 : vector<8x128xf32>
      %c0_28 = arith.constant 0 : index
      %c0_29 = arith.constant 0 : index
      %c0_30 = arith.constant 0 : index
      %46 = vector.load %arg5[%c0_28, %c0_29, %c0_30] : memref<1x8x128xf32, #tpu.memory_space<vmem>>, vector<1x8x128xf32>
      %47 = vector.shape_cast %46 : vector<1x8x128xf32> to vector<8x128xf32>
      %48 = vector.shape_cast %45 : vector<8x128xf32> to vector<1x8x128xf32>
      tpu.vector_store %arg5[%c0_28, %c0_29, %c0_30], %48 {strides = array<i32>} : memref<1x8x128xf32, #tpu.memory_space<vmem>>, vector<1x8x128xf32>,
    } else {
    }
    return
  }
  func.func @transform_0(%arg0: i32, %arg1: i32, %arg2: i32) -> (i32, i32, i32) {
    %c0_i32 = arith.constant 0 : i32
    %c0_i32_0 = arith.constant 0 : i32
    return %arg0, %arg2, %c0_i32 : i32, i32, i32
  }
  func.func @transform_1(%arg0: i32, %arg1: i32, %arg2: i32) -> (i32, i32, i32) {
    %c0_i32 = arith.constant 0 : i32
    %c0_i32_0 = arith.constant 0 : i32
    return %arg0, %arg1, %c0_i32 : i32, i32, i32
  }
  func.func @transform_2(%arg0: i32, %arg1: i32, %arg2: i32) -> (i32, i32, i32) {
    %c0_i32 = arith.constant 0 : i32
    %c0_i32_0 = arith.constant 0 : i32
    return %arg0, %arg1, %c0_i32 : i32, i32, i32
  }
}

</mosaic_0001>

<bundles_post_ra>
// kernel: tpu_custom_call.1
= control target key start
LH: loop header
LB: loop body
LE: loop exit
PB: predicated region body
PF: predicated region fallthrough
CT: control target
= control target key end

     0   :  { %7 = vsyncpa [#allocation6], 0  ;;  %s909_s0 = inlined_call_operand.hbm [shape: f32[2,128,128], index: 0, kind: input, shape index: {}]   ;;  %s910_s1 = inlined_call_operand.hbm [shape: f32[2,8,128], index: 1, kind: input, shape index: {}]   ;;  %s911_s2 = inlined_call_operand.hbm [shape: f32[2,8,128], index: 2, kind: output, shape index: {}]  }
   0x1   :  { %9 = vsyncpa [#allocation6 + $0x1], 0 }
   0x2   :  { %10 = vsyncpa [#allocation9], 0 }
   0x3   :  { %12 = vsyncpa [#allocation9 + $0x1], 0 }
   0x4   :  { %13 = vsyncpa [#allocation7], 0 }
   0x5   :  { %15 = vsyncpa [#allocation7 + $0x1], 0  ;;  %s742_s9 = smov 0   ;;  %s744_s10 = smov 0  }
   0x6   :  { %s746_s11 = smov 0   ;;  %s748_s12 = smov 0  }
   0x7   :  { %s750_s13 = smov 0   ;;  %s752_s14 = smov 0  }
   0x8 LB: > { %s475_s15 = sadd.s32 4294967295, %s720_s14   ;;  %s476_s16 = sadd.s32 4294967294, %s720_s14   ;;  %s720_s14 = sphi %s752_s14, %s21_s14   ;;  %s716_s13 = sphi %s750_s13, %s921_s13   ;;  %s712_s12 = sphi %s748_s12, %s920_s12   ;;  %s708_s11 = sphi %s746_s11, %s919_s11   ;;  %s704_s10 = sphi %s744_s10, %s918_s10   ;;  %s700_s9 = sphi %s742_s9, %s917_s9  }
   0x9   : > { %s40_s17 = sadd.s32 1, %s716_s13  ;;  %s49_s18 = sadd.s32 1, %s708_s11 }
   0xa   : > { %p42_p0 = scmp.ge.s32.totalorder %s40_s17, 2  ;;  %p56_p1 = scmp.ne.s32.totalorder %s708_s11, %s704_s10 }
   0xb   : > { %p57_p2 = scmp.eq.s32.totalorder %s720_s14, 0  ;;  %p62_p3 = scmp.ne.s32.totalorder %s704_s10, %s700_s9 }
   0xc   : > { %s923_s17 = smov (%p42_p0, %s40_s17), 0  ;;  %p63_p5 = scmp.eq.s32.totalorder %s475_s15, 0 }
   0xd   : > { %p783_p4 = por %p57_p2, %p56_p1  ;;  %s44_s20 = ssub.s32 %s716_s13, %s923_s17 }
   0xe   : > { %p116_p6 = scmp.eq.s32.totalorder %s475_s15, 1  ;;  %p47_p7 = scmp.eq.s32.totalorder %s44_s20, 0 }
   0xf   : > { %p789_p8 = por %p63_p5, %p62_p3  ;;  %p122_p10 = scmp.eq.s32.totalorder %s476_s16, 1 }
  0x10   : > { %p793_p9 = por %p116_p6, %p56_p1  ;;  %p478_p12 = scmp.ge.s32.totalorder %s720_s14, 2 }
  0x11   : > { %s798_s23 = scalar_select %p47_p7, %s708_s11, %s49_s18  }
  0x12   : > { %p800_p11 = por %p122_p10, %p62_p3  ;;  %p510_p13 = scmp.lt.s32.totalorder %s720_s14, 2 }
  0x13   : > { %s142_s25 = sand.u32 1, %s708_s11   ;;  %s492_s27 = sshll.u32 %s716_s13, 7 }
  0x14   : > { %s479_s26 = sshll.u32 %s142_s25, 7  ;;  %s153_s30 = scalar_lea.hbm %s909_s0, %s492_s27 }
  0x15   : > { %s146_s3 = scalar_lea.vmem [#allocation5], %s479_s26  ;;  %s154_s5 = sshll.u32 %s153_s30, 4  ;;  %s155_s5 = int_to_ptr.hbm [resolvable:$true] %s154_s5 }
  0x16   : > { %s156_s4 = sshll.u32 %s146_s3, 4  ;;  %p813_p0 = pnand %p510_p13, %p783_p4  ;;  %s157_s4 = int_to_ptr.vmem [resolvable:$true] %s156_s4 }
  0x17   : > { %p484_p1 = scmp.ge.s32.totalorder %s720_s14, 1  ;;  %s143_s7 = scalar_lea.sflag [#allocation6], %s142_s25 }
  0x18   : > { %s722_s8 = smov 128   ;;  %s723_s15 = smov 8  }
  0x19   : > { %502 = dma.hbm_to_vmem [thread:$0]  (!%p813_p0), %s155_s5, 2048, %s157_s4, %s143_s7, %s722_s8, %s722_s8, %s723_s15  }
  0x1a   : > { %p184_p2 = scmp.lt.s32.totalorder %s720_s14, 3  ;;  %s482_s16 = sshll.u32 %s142_s25, 3 }
  0x1b   : > { %s483_s18 = sshll.u32 %s716_s13, 3  ;;  %s170_s27 = scalar_lea.vmem [#allocation8], %s482_s16 }
  0x1c   : > { %p185_p3 = pnand %p484_p1, %p184_p2  ;;  %s175_s19 = scalar_lea.hbm %s910_s1, %s483_s18 }
  0x1d   : > { %s179_s28 = sshll.u32 %s170_s27, 4  ;;  %s177_s29 = sshll.u32 %s175_s19, 4  ;;  %s180_s28 = int_to_ptr.vmem [resolvable:$true] %s179_s28  ;;  %s178_s29 = int_to_ptr.hbm [resolvable:$true] %s177_s29 }
  0x1e   : > { %s167_s30 = scalar_lea.sflag [#allocation9], %s142_s25  ;;  %188 = sbr.rel (%p185_p3) target bundleno = 703 (0x2bf), region = 28 }
  0x1f   : > { %505 = dma.hbm_to_vmem [thread:$0]  (!%p813_p0), %s178_s29, 128, %s180_s28, %s167_s30  }
  0x20   : > { %s828_s3 = sand.u32 (!%p185_p3), 1, %s704_s10  }
  0x21   : > { %s485_s4 = sshll.u32 (!%p185_p3), %s828_s3, 7  ;;  %s191_s5 = scalar_lea.sflag (!%p185_p3), [#allocation6], %s828_s3 }
  0x22   : > { %s832_s7 = scalar_lea.vmem (!%p185_p3), [#allocation5], %s485_s4 }
  0x23   : > { %687 = dma.done.wait (%p789_p8), %s191_s5, 2048  }
  0x24   : > { %689 = vsyncadd (%p789_p8), %s191_s5, 4294965248  ;;  %s486_s25 = sshll.u32 %s828_s3, 3  ;;  %s201_s6 = scalar_lea.sflag [#allocation9], %s828_s3 }
  0x25   : > { %s842_s8 = scalar_lea.vmem [#allocation8], %s486_s25 }
  0x26   : > { %691 = dma.done.wait (%p789_p8), %s201_s6, 128  }
  0x27   : > { %693 = vsyncadd (%p789_p8), %s201_s6, 4294967168  ;;  %v255_v0 = vld [vmem:[%s832_s7 + $0x78] sm:$0xff]  ;;  %v254_v1 = vld [vmem:[%s832_s7 + $0x70] sm:$0xff]  ;;  %vm236_vm0 = vcmask 7168   ;;  %v724_v17 = vmov -inf   ;;  %v278_v18 = vlaneseq  ;;  %v725_v22 = vmov 0  }
  0x28   : > { %257 = vmatpush.xpose.msra.mxu0 %v255_v0  ;;  %313 = vmatpush.msra.mxu1 %v255_v0  ;;  %v253_v2 = vld [vmem:[%s832_s7 + $0x68] sm:$0xff]  ;;  %v252_v3 = vld [vmem:[%s832_s7 + $0x60] sm:$0xff]  ;;  %v251_v4 = vld [vmem:[%s832_s7 + $0x58] sm:$0xff]  ;;  %237 = vst.msk [vmem:[#allocation2] sm:$0xff] %vm236_vm0, %v724_v17  ;;  %v726_v23 = vmov 0.0   ;;  %s489_s21 = sshll.u32 %s712_s12, 3 }
  0x29   : > { %v250_v5 = vld [vmem:[%s832_s7 + $0x50] sm:$0xff]  ;;  %v249_v6 = vld [vmem:[%s832_s7 + $0x48] sm:$0xff]  ;;  %v248_v7 = vld [vmem:[%s832_s7 + $0x40] sm:$0xff]  ;;  %v279_v19 = vand.u32 127, %v278_v18  ;;  %565 = vset.pattern.permute.xlu0 %v725_v22  ;;  %566 = vset.pattern.permute.xlu1 %v725_v22  ;;  %238 = vst.msk [vmem:[#allocation3] sm:$0xff] %vm236_vm0, %v726_v23  ;;  %s361_s18 = scalar_lea.hbm %s911_s2, %s489_s21  ;;  %s230_s20 = scalar_lea.vmem [#allocation10], %s486_s25 }
  0x2a   : > { %314 = vmatpush.msra.mxu1 %v254_v1  ;;  %v247_v8 = vld [vmem:[%s832_s7 + $0x38] sm:$0xff]  ;;  %v246_v9 = vld [vmem:[%s832_s7 + $0x30] sm:$0xff]  ;;  %v245_v10 = vld [vmem:[%s832_s7 + $0x28] sm:$0xff]  ;;  %567 = vset.pattern.permute.xlu2 %v725_v22  ;;  %s363_s26 = sshll.u32 %s230_s20, 4  ;;  %s365_s19 = sshll.u32 %s361_s18, 4  ;;  %s364_s26 = int_to_ptr.vmem [resolvable:$true] %s363_s26  ;;  %s366_s19 = int_to_ptr.hbm [resolvable:$true] %s365_s19 }
  0x2b   : > { %v244_v11 = vld [vmem:[%s832_s7 + $0x20] sm:$0xff]  ;;  %v243_v12 = vld [vmem:[%s832_s7 + $0x18] sm:$0xff]  ;;  %v242_v13 = vld [vmem:[%s832_s7 + $0x10] sm:$0xff]  ;;  %vm282_vm1 = vcmp.lt.s32.totalorder %v279_v19, 8  ;;  %s350_s27 = scalar_lea.sflag [#allocation7], %s828_s3  ;;  %s648_s28 = sshra.s32 %s366_s19, 4  ;;  %s649_s28 = int_to_ptr.hbm [resolvable:$true] %s648_s28 }
  0x2c   : > { %258 = vmatpush.xpose.msra.mxu0 %v254_v1  ;;  %315 = vmatpush.msra.mxu1 %v253_v2  ;;  %v241_v14 = vld [vmem:[%s832_s7 + $0x8] sm:$0xff]  ;;  %v240_v15 = vld [vmem:[%s832_s7] sm:$0xff]  ;;  %s650_s12 = scalar_lea.hbm %s649_s28, 8  ;;  %s654_s4 = scalar_lea.hbm %s911_s2, 16 }
  0x2d   : > { %v256_v16 = vld [vmem:[%s842_s8] sm:$0xff]  ;;  %p651_p4 = scmp.ne.s32.totalorder %s649_s28, %s650_s12  ;;  %p655_p7 = scmp.lt.s32.totalorder %s649_s28, %s911_s2 }
  0x2e   : > { %316 = vmatpush.msra.mxu1 %v252_v3  ;;  %p656_p8 = scmp.lt.s32.totalorder %s654_s4, %s650_s12 }
  0x2f   : > { %v284_v24 = vld [vmem:[#allocation2] sm:$0xff]  ;;  %p652_p5 = pnand %p651_p4, %p793_p9 }
  0x30   : > { %259 = vmatpush.xpose.msra.mxu0 %v253_v2  ;;  %317 = vmatpush.msra.mxu1 %v251_v4  ;;  %v299_v34 = vld [vmem:[#allocation3] sm:$0xff]  ;;  %p657_p10 = por %p656_p8, %p655_p7 }
  0x31   : > { %p653_p6 = pneg %p652_p5 }
  0x32   : > { %318 = vmatpush.msra.mxu1 %v250_v5 }
  0x33   : > { %p658_p13 = pnand %p657_p10, %p653_p6 }
  0x34   : > { %260 = vmatpush.xpose.msra.mxu0 %v252_v3  ;;  %319 = vmatpush.msra.mxu1 %v249_v6 }
  0x36   : > { %320 = vmatpush.msra.mxu1 %v248_v7 }
  0x38   : > { %261 = vmatpush.xpose.msra.mxu0 %v251_v4  ;;  %321 = vmatpush.msra.mxu1 %v247_v8 }
  0x3a   : > { %322 = vmatpush.msra.mxu1 %v246_v9 }
  0x3c   : > { %262 = vmatpush.xpose.msra.mxu0 %v250_v5  ;;  %323 = vmatpush.msra.mxu1 %v245_v10 }
  0x3e   : > { %324 = vmatpush.msra.mxu1 %v244_v11 }
  0x40   : > { %263 = vmatpush.xpose.msra.mxu0 %v249_v6  ;;  %325 = vmatpush.msra.mxu1 %v243_v12 }
  0x42   : > { %326 = vmatpush.msra.mxu1 %v242_v13 }
  0x44   : > { %264 = vmatpush.xpose.msra.mxu0 %v248_v7  ;;  %327 = vmatpush.msra.mxu1 %v241_v14 }
  0x46   : > { %328 = vmatpush.msra.mxu1 %v240_v15 }
  0x48   : > { %265 = vmatpush.xpose.msra.mxu0 %v247_v8 }
  0x4c   : > { %266 = vmatpush.xpose.msra.mxu0 %v246_v9 }
  0x50   : > { %267 = vmatpush.xpose.msra.mxu0 %v245_v10 }
  0x54   : > { %268 = vmatpush.xpose.msra.mxu0 %v244_v11 }
  0x58   : > { %269 = vmatpush.xpose.msra.mxu0 %v243_v12 }
  0x5c   : > { %270 = vmatpush.xpose.msra.mxu0 %v242_v13 }
  0x60   : > { %271 = vmatpush.xpose.msra.mxu0 %v241_v14 }
  0x64   : > { %272 = vmatpush.xpose.msra.mxu0 %v240_v15 }
  0x67   : > { %273 = vmatmul.f32.vlgmr.msra.gmra.mxu0 %v256_v16 }
  0xe4   : > { %v274_v20 = vpop.f32.mrf.mxu0 }
  0xe5   : > { %v283_v21 = vsel %vm282_vm1, %v274_v20, -inf }
  0xe6   : > { %285 = vmax.xlane.f32.xlu0 %v283_v21 }
 0x159   : > { %v286_v25 = vpop.xlane.xlu0 %285 }
 0x15a   : > { %v287_v26 = vmax.f32 %v284_v24, %v286_v25 }
 0x15c   : > { %v288_v27 = vsub.f32 %v284_v24, %v287_v26  ;;  %335 = vst.msk [vmem:[#allocation2] sm:$0xff] %vm236_vm0, %v287_v26  ;;  %293 = vperm.xlu0 %565, %v287_v26  }
 0x15e   : > { %v289_v32 = vmul.f32 1.442695, %v288_v27 }
 0x1ce   : > { %v294_v28 = vpop.permute.xlu0 %293 }
 0x1cf   : > { %v296_v29 = vsub.f32 %v283_v21, %v294_v28 }
 0x1d1   : > { %v297_v30 = vmul.f32 1.442695, %v296_v29 }
 0x1d3   : > { %568 = vpow2.f32 %v297_v30 }
 0x1d4   : > { %570 = vpow2.f32 %v289_v32 }
 0x1d9   : > { %v569_v31 = vpop.eup %568 }
 0x1da   : > { %301 = vadd.xlane.f32.xlu1 %v569_v31  ;;  %329 = vmatmul.f32.vlgmr.msra.gmra.mxu1 %v569_v31  ;;  %v571_v33 = vpop.eup %570 }
 0x1db   : > { %v300_v35 = vmul.f32 %v571_v33, %v299_v34 }
 0x1f3   : > { %309 = vperm.xlu1 %566, %v571_v33  }
 0x24d   : > { %v302_v36 = vpop.xlane.xlu1 %301 }
 0x24e   : > { %v303_v37 = vadd.f32 %v302_v36, %v300_v35 }
 0x250   : > { %305 = vst.msk [vmem:[#allocation3] sm:$0xff] %vm236_vm0, %v303_v37 }
 0x257   : > { %v340_v38 = vld [vmem:[#allocation3] sm:$0xff]  ;;  %v330_v42 = vpop.f32.mrf.mxu1 }
 0x258   : > { %572 = vrcp.f32 %v340_v38 }
 0x25e   : > { %v573_v39 = vpop.eup %572 }
 0x25f   : > { %344 = vperm.xlu2 %567, %v573_v39  }
 0x265   : > { %v310_v40 = vpop.permute.xlu1 %309 }
 0x266   : > { %v312_v41 = vmul.f32 0.0, %v310_v40 }
 0x268   : > { %v333_v43 = vadd.f32 %v330_v42, %v312_v41 }
 0x2b9   : > { %v345_v44 = vpop.permute.xlu2 %344 }
 0x2ba   : > { %v347_v45 = vmul.f32 %v345_v44, %v333_v43 }
 0x2bc   : > { %348 = vst [vmem:[%s230_s20] sm:$0xff] %v347_v45 }
 0x2bd   : > { %661 = shalt.err (!%p658_p13)
}
 0x2be   : > { %497 = dma.vmem_to_hbm [thread:$0]  (%p793_p9), %s364_s26, 128, %s366_s19, %s350_s27  }
 0x2bf PF: > { %s377_s3 = sand.u32 1, %s700_s9   ;;  %p507_p0 = pnand %p478_p12, %p800_p11 }
 0x2c0   : > { %s378_s25 = scalar_lea.sflag [#allocation7], %s377_s3 }
 0x2c1   : > { %p508_p1 = pneg %p507_p0 }
 0x2c3   : > { %695 = dma.done.wait (%p508_p1), %s378_s25, 128  }
 0x2c4   : > { %697 = vsyncadd (%p508_p1), %s378_s25, 4294967168  ;;  %s21_s14 = sadd.s32 1, %s720_s14   ;;  %s917_s9 = smov %s704_s10 }
 0x2c5   : > { %p18_p2 = scmp.ge.s32.totalorder %s21_s14, 4   ;;  %s918_s10 = smov %s708_s11 }
 0x2c6   : > { %s919_s11 = smov %s798_s23  ;;  %s920_s12 = smov %s716_s13 }
 0x2c7   : > { %s921_s13 = smov %s923_s17  ;;  %20 = sbr.rel (!%p18_p2) target bundleno = 8 (0x8), region = 94 }
 0x2cc   :  { %384 = vsyncpa [#allocation6], 1 }
 0x2cd   :  { %386 = vsyncpa [#allocation6 + $0x1], 1 }
 0x2ce   :  { %387 = vsyncpa [#allocation9], 1 }
 0x2cf   :  { %389 = vsyncpa [#allocation9 + $0x1], 1 }
 0x2d0   :  { %390 = vsyncpa [#allocation7], 1 }
 0x2d1   :  { %392 = vsyncpa [#allocation7 + $0x1], 1 }

</bundles_post_ra>
